<compile_context>
chip_gen: v7x
topology: tpu7x:2x2x1
jax: 0.10.0
libtpu: 0.0.40
codegen_flags: <defaults>
</compile_context>

<pallas_src>
import jax
import jax.numpy as jnp
from jax.experimental import pallas as pl
from jax.experimental.pallas import tpu as pltpu

HIDDEN = 64
TILE_N = 4096     # batch tile (lanes); sweep 2048/4096/8192 on real workloads
LANE_TILE = 128   # minimum lane granularity (lane-dense loads/stores)


def _round_up(n, m):
    return pl.cdiv(n, m) * m


def _default_compute_dtype():
    """bf16 elementwise math only helps on chips with a bf16 VPU (v6e/v7x)."""
    try:
        kind = jax.devices()[0].device_kind.lower()
    except Exception:
        return jnp.float32
    if any(tag in kind for tag in ("v6", "v7")):
        return jnp.bfloat16
    return jnp.float32   # v5e and older: keep VPU math in f32


def curve_mlp_kernel(x_ref, w1_ref, b1_ref, w2t_ref, b2_ref, w3t_ref, b3_ref, o_ref):
    # Feature-major layout: features on sublanes, batch on lanes.

    # Layer 1 (in_features == 1): VPU broadcast FMA + ReLU.  A K=1 MXU
    # contraction would be pure push/pop overhead.  Runs in the compute dtype
    # chosen by the wrapper (bf16 on v6e/v7x, f32 on v5e).
    h1 = jnp.maximum(w1_ref[...] * x_ref[...] + b1_ref[...], 0.0)      # (64, TN)
    h1 = h1.astype(jnp.bfloat16)  # no-op when compute dtype is already bf16

    # Layer 2: the only dense matmul -> MXU, bf16 operands, f32 accumulation.
    h2 = jnp.dot(w2t_ref[...], h1, preferred_element_type=jnp.float32)  # (64, TN)
    h2 = jnp.maximum(h2 + b2_ref[...], 0.0)                             # f32

    # Layer 3 (out_features == 1): (1,64)x(64,TN) on the idle MXU instead of a
    # VPU multiply + cross-sublane reduce; bias add stays in f32.
    out = jnp.dot(w3t_ref[...], h2.astype(jnp.bfloat16),
                  preferred_element_type=jnp.float32) + b3_ref[...]     # (1, TN)
    o_ref[...] = out.astype(o_ref.dtype)


def prepare_curve_params(w1, b1, w2, b2, w3, b3, compute_dtype=jnp.float32):
    """One-time feature-major layout + dtype prep (cache to avoid per-call work).

    Params are stored (in_features, out_features) / (1, out_features), i.e.
    forward is x @ W + b, matching nn.Linear semantics.
    """
    return (
        jnp.transpose(w1).astype(compute_dtype),      # (64, 1)  layer-1 column
        jnp.transpose(b1).astype(compute_dtype),      # (64, 1)
        jnp.transpose(w2).astype(jnp.bfloat16),       # (64, 64) W2^T (out, in)
        jnp.transpose(b2).astype(jnp.float32),        # (64, 1)
        jnp.transpose(w3).astype(jnp.bfloat16),       # (1, 64)  W3^T row
        jnp.reshape(b3, (1, 1)).astype(jnp.float32),  # (1, 1)
    )


def curve_forward(x, w1, b1, w2, b2, w3, b3, *, tile_n=TILE_N, compute_dtype=None):
    """x: (N, 1) f32 -> (N, 1) f32."""
    if compute_dtype is None:
        compute_dtype = _default_compute_dtype()

    n = x.shape[0]
    # Tile big enough to amortize ~0.35us per-grid-step overhead, but never
    # larger than the padded batch (keeps small-batch padding / VMEM tiny).
    eff_tile = min(tile_n, _round_up(n, LANE_TILE))
    n_pad = _round_up(n, eff_tile)

    # Batch-in-lanes input slab (1, n_pad), single pad, no zeros+scatter.
    xt = jnp.pad(x[:, 0][None, :].astype(compute_dtype), ((0, 0), (0, n_pad - n)))

    prepared = prepare_curve_params(w1, b1, w2, b2, w3, b3, compute_dtype)
    w1c, b1c, w2t, b2c, w3t, b3c = prepared

    grid = (n_pad // eff_tile,)
    param_spec = lambda shape: pl.BlockSpec(shape, lambda i: (0, 0))

    cost = pl.CostEstimate(
        flops=2 * n_pad * (HIDDEN + HIDDEN * HIDDEN + HIDDEN),
        transcendentals=0,
        bytes_accessed=int(xt.size * xt.dtype.itemsize          # x in
                           + n_pad * 4                          # out
                           + sum(int(p.size) * p.dtype.itemsize for p in prepared)),
    )

    out = pl.pallas_call(
        curve_mlp_kernel,
        out_shape=jax.ShapeDtypeStruct((1, n_pad), jnp.float32),
        grid=grid,
        in_specs=[
            pl.BlockSpec((1, eff_tile), lambda i: (0, i)),   # x tile (batch in lanes)
            param_spec((HIDDEN, 1)),                         # w1 column
            param_spec((HIDDEN, 1)),                         # b1 column
            param_spec((HIDDEN, HIDDEN)),                    # W2^T (bf16), resident
            param_spec((HIDDEN, 1)),                         # b2 column
            param_spec((1, HIDDEN)),                         # W3^T row (bf16)
            param_spec((1, 1)),                              # b3 scalar
        ],
        out_specs=pl.BlockSpec((1, eff_tile), lambda i: (0, i)),
        compiler_params=pltpu.CompilerParams(
            dimension_semantics=("parallel",),
        ),
        cost_estimate=cost,
    )(xt, w1c, b1c, w2t, b2c, w3t, b3c)

    return out[0, :n].reshape(n, 1)


def init_params(key):
    # Deterministic synthetic init (uniform, Kaiming-ish bounds like nn.Linear).
    ks = jax.random.split(key, 6)

    def lin(kw, kb, fan_in, fan_out):
        bound = 1.0 / jnp.sqrt(fan_in)
        w = jax.random.uniform(kw, (fan_in, fan_out), jnp.float32, -bound, bound)
        b = jax.random.uniform(kb, (1, fan_out), jnp.float32, -bound, bound)
        return w, b

    w1, b1 = lin(ks[0], ks[1], 1, HIDDEN)
    w2, b2 = lin(ks[2], ks[3], HIDDEN, HIDDEN)
    w3, b3 = lin(ks[4], ks[5], HIDDEN, 1)
    return w1, b1, w2, b2, w3, b3


def curve_reference_f32(x, w1, b1, w2, b2, w3, b3):
    h1 = jnp.maximum(x @ w1 + b1, 0.0)
    h2 = jnp.maximum(h1 @ w2 + b2, 0.0)
    return h2 @ w3 + b3


def curve_reference_mixed(x, w1, b1, w2, b2, w3, b3, compute_dtype=jnp.float32):
    """Mirrors the kernel's precision structure: layer-1 elementwise math in
    compute_dtype, bf16 operands / f32 accumulation for both MXU dots, f32
    bias adds and ReLU on h2, f32 output."""
    cd = compute_dtype
    h1 = jnp.maximum(x.astype(cd) * w1.astype(cd) + b1.astype(cd), 0.0)   # (N, 64)
    h1 = h1.astype(jnp.bfloat16)
    h2 = jnp.dot(h1, w2.astype(jnp.bfloat16), preferred_element_type=jnp.float32)
    h2 = jnp.maximum(h2 + b2, 0.0)
    out = jnp.dot(h2.astype(jnp.bfloat16), w3.astype(jnp.bfloat16),
                  preferred_element_type=jnp.float32) + b3
    return out


if __name__ == "__main__":
    key = jax.random.PRNGKey(0)
    k_x, k_p = jax.random.split(key)

    batch = 8
    x = jax.random.normal(k_x, (batch, 1), jnp.float32)
    params = init_params(k_p)

    compute_dtype = _default_compute_dtype()
    out = jax.block_until_ready(curve_forward(x, *params, compute_dtype=compute_dtype))

    assert out.shape == (batch, 1), out.shape
    ref_mixed = curve_reference_mixed(x, *params, compute_dtype=compute_dtype)
    ref_f32 = curve_reference_f32(x, *params)
    assert jnp.allclose(out, ref_mixed, atol=5e-3, rtol=5e-3), \
        "mismatch vs mixed-precision reference"
    assert jnp.allclose(out, ref_f32, atol=3e-2, rtol=3e-2), \
        "mismatch vs f32 reference"

    print("KERNEL_OK")
</pallas_src>

<mosaic_0001>
module attributes {stable_mosaic.version = 11 : i64} {
  func.func @curve_mlp_kernel(%arg0: i32, %arg1: memref<1x128xf32, #tpu.memory_space<vmem>>, %arg2: memref<64x1xf32, #tpu.memory_space<vmem>>, %arg3: memref<64x1xf32, #tpu.memory_space<vmem>>, %arg4: memref<64x64xbf16, #tpu.memory_space<vmem>>, %arg5: memref<64x1xf32, #tpu.memory_space<vmem>>, %arg6: memref<1x64xbf16, #tpu.memory_space<vmem>>, %arg7: memref<1x1xf32, #tpu.memory_space<vmem>>, %arg8: memref<1x128xf32, #tpu.memory_space<vmem>>) attributes {dimension_semantics = [#tpu.dimension_semantics<parallel>], iteration_bounds = array<i64: 1>, scalar_prefetch = 0 : i64, scratch_operands = 0 : i64, tpu.core_type = #tpu.core_type<tc>, window_params = [{transform_indices = @transform_0, window_bounds = array<i64: 1, 128>}, {pipeline_mode = #tpu.pipeline_mode<synchronous>, transform_indices = @transform_1, window_bounds = array<i64: 64, 1>}, {pipeline_mode = #tpu.pipeline_mode<synchronous>, transform_indices = @transform_2, window_bounds = array<i64: 64, 1>}, {pipeline_mode = #tpu.pipeline_mode<synchronous>, transform_indices = @transform_3, window_bounds = array<i64: 64, 64>}, {pipeline_mode = #tpu.pipeline_mode<synchronous>, transform_indices = @transform_4, window_bounds = array<i64: 64, 1>}, {pipeline_mode = #tpu.pipeline_mode<synchronous>, transform_indices = @transform_5, window_bounds = array<i64: 1, 64>}, {pipeline_mode = #tpu.pipeline_mode<synchronous>, transform_indices = @transform_6, window_bounds = array<i64: 1, 1>}, {transform_indices = @transform_7, window_bounds = array<i64: 1, 128>}]} {
    %c0 = arith.constant 0 : index
    %c0_0 = arith.constant 0 : index
    %0 = vector.load %arg2[%c0, %c0_0] : memref<64x1xf32, #tpu.memory_space<vmem>>, vector<64x1xf32>
    %c0_1 = arith.constant 0 : index
    %c0_2 = arith.constant 0 : index
    %1 = vector.load %arg1[%c0_1, %c0_2] : memref<1x128xf32, #tpu.memory_space<vmem>>, vector<1x128xf32>
    %2 = vector.broadcast %0 : vector<64x1xf32> to vector<64x128xf32>
    %3 = vector.broadcast %1 : vector<1x128xf32> to vector<64x128xf32>
    %4 = arith.mulf %2, %3 : vector<64x128xf32>
    %c0_3 = arith.constant 0 : index
    %c0_4 = arith.constant 0 : index
    %5 = vector.load %arg3[%c0_3, %c0_4] : memref<64x1xf32, #tpu.memory_space<vmem>>, vector<64x1xf32>
    %6 = vector.broadcast %5 : vector<64x1xf32> to vector<64x128xf32>
    %7 = arith.addf %4, %6 : vector<64x128xf32>
    %cst = arith.constant 0.000000e+00 : f32
    %8 = vector.broadcast %cst : f32 to vector<64x128xf32>
    %9 = arith.maximumf %7, %8 : vector<64x128xf32>
    %10 = arith.truncf %9 : vector<64x128xf32> to vector<64x128xbf16>
    %c0_5 = arith.constant 0 : index
    %c0_6 = arith.constant 0 : index
    %11 = vector.load %arg4[%c0_5, %c0_6] : memref<64x64xbf16, #tpu.memory_space<vmem>>, vector<64x64xbf16>
    %cst_7 = arith.constant dense<0.000000e+00> : vector<64x128xf32>
    %12 = tpu.matmul %11, %10, %cst_7 {dimension_numbers = #tpu.dot_dimension_numbers<[1], [0], [0], [1], [0, 0, 1, 1], [], []>} : vector<64x64xbf16>, vector<64x128xbf16>, vector<64x128xf32> -> vector<64x128xf32>
    %c0_8 = arith.constant 0 : index
    %c0_9 = arith.constant 0 : index
    %13 = vector.load %arg5[%c0_8, %c0_9] : memref<64x1xf32, #tpu.memory_space<vmem>>, vector<64x1xf32>
    %14 = vector.broadcast %13 : vector<64x1xf32> to vector<64x128xf32>
    %15 = arith.addf %12, %14 : vector<64x128xf32>
    %cst_10 = arith.constant 0.000000e+00 : f32
    %16 = vector.broadcast %cst_10 : f32 to vector<64x128xf32>
    %17 = arith.maximumf %15, %16 : vector<64x128xf32>
    %c0_11 = arith.constant 0 : index
    %c0_12 = arith.constant 0 : index
    %18 = vector.load %arg6[%c0_11, %c0_12] : memref<1x64xbf16, #tpu.memory_space<vmem>>, vector<1x64xbf16>
    %19 = arith.truncf %17 : vector<64x128xf32> to vector<64x128xbf16>
    %cst_13 = arith.constant dense<0.000000e+00> : vector<1x128xf32>
    %20 = tpu.matmul %18, %19, %cst_13 {dimension_numbers = #tpu.dot_dimension_numbers<[1], [0], [0], [1], [0, 0, 1, 1], [], []>} : vector<1x64xbf16>, vector<64x128xbf16>, vector<1x128xf32> -> vector<1x128xf32>
    %c0_14 = arith.constant 0 : index
    %c0_15 = arith.constant 0 : index
    %21 = vector.load %arg7[%c0_14, %c0_15] : memref<1x1xf32, #tpu.memory_space<vmem>>, vector<1x1xf32>
    %22 = vector.broadcast %21 : vector<1x1xf32> to vector<1x128xf32>
    %23 = arith.addf %20, %22 : vector<1x128xf32>
    %c0_16 = arith.constant 0 : index
    %c0_17 = arith.constant 0 : index
    %24 = vector.load %arg8[%c0_16, %c0_17] : memref<1x128xf32, #tpu.memory_space<vmem>>, vector<1x128xf32>
    tpu.vector_store %arg8[%c0_16, %c0_17], %23 {strides = array<i32>} : memref<1x128xf32, #tpu.memory_space<vmem>>, vector<1x128xf32>,
    return
  }
  func.func @transform_0(%arg0: i32) -> (i32, i32) {
    %c0_i32 = arith.constant 0 : i32
    %c0_i32_0 = arith.constant 0 : i32
    return %c0_i32, %arg0 : i32, i32
  }
  func.func @transform_1(%arg0: i32) -> (i32, i32) {
    %c0_i32 = arith.constant 0 : i32
    %c0_i32_0 = arith.constant 0 : i32
    %c0_i32_1 = arith.constant 0 : i32
    return %c0_i32, %c0_i32_0 : i32, i32
  }
  func.func @transform_2(%arg0: i32) -> (i32, i32) {
    %c0_i32 = arith.constant 0 : i32
    %c0_i32_0 = arith.constant 0 : i32
    %c0_i32_1 = arith.constant 0 : i32
    return %c0_i32, %c0_i32_0 : i32, i32
  }
  func.func @transform_3(%arg0: i32) -> (i32, i32) {
    %c0_i32 = arith.constant 0 : i32
    %c0_i32_0 = arith.constant 0 : i32
    %c0_i32_1 = arith.constant 0 : i32
    return %c0_i32, %c0_i32_0 : i32, i32
  }
  func.func @transform_4(%arg0: i32) -> (i32, i32) {
    %c0_i32 = arith.constant 0 : i32
    %c0_i32_0 = arith.constant 0 : i32
    %c0_i32_1 = arith.constant 0 : i32
    return %c0_i32, %c0_i32_0 : i32, i32
  }
  func.func @transform_5(%arg0: i32) -> (i32, i32) {
    %c0_i32 = arith.constant 0 : i32
    %c0_i32_0 = arith.constant 0 : i32
    %c0_i32_1 = arith.constant 0 : i32
    return %c0_i32, %c0_i32_0 : i32, i32
  }
  func.func @transform_6(%arg0: i32) -> (i32, i32) {
    %c0_i32 = arith.constant 0 : i32
    %c0_i32_0 = arith.constant 0 : i32
    %c0_i32_1 = arith.constant 0 : i32
    return %c0_i32, %c0_i32_0 : i32, i32
  }
  func.func @transform_7(%arg0: i32) -> (i32, i32) {
    %c0_i32 = arith.constant 0 : i32
    %c0_i32_0 = arith.constant 0 : i32
    return %c0_i32, %arg0 : i32, i32
  }
}

</mosaic_0001>

<bundles_post_ra>
// kernel: tpu_custom_call.1
= control target key start
LH: loop header
LB: loop body
LE: loop exit
PB: predicated region body
PF: predicated region fallthrough
CT: control target
= control target key end

     0   :  { %s635_s0 = inlined_call_operand.vmem [shape: f32[1,128], index: 0, kind: input, shape index: {}]   ;;  %s636_s1 = inlined_call_operand.vmem [shape: f32[64,1], index: 1, kind: input, shape index: {}]   ;;  %s637_s2 = inlined_call_operand.vmem [shape: f32[64,1], index: 2, kind: input, shape index: {}]   ;;  %s638_s3 = inlined_call_operand.vmem [shape: bf16[64,64], index: 3, kind: input, shape index: {}]   ;;  %s639_s4 = inlined_call_operand.vmem [shape: f32[64,1], index: 4, kind: input, shape index: {}]   ;;  %s640_s5 = inlined_call_operand.vmem [shape: bf16[1,64], index: 5, kind: input, shape index: {}]   ;;  %s641_s6 = inlined_call_operand.<no memory space> [shape: f32[1,1], index: 6, kind: input, shape index: {}]   ;;  %s642_s7 = inlined_call_operand.hbm [shape: f32[1,128], index: 7, kind: output, shape index: {}]  }
   0x1   :  { %v12_v0 = vstv %s641_s6 }
   0x2   :  { %13 = vst [vmem:[#allocation2] sm:$0x1] %v12_v0 }
   0x3   :  { %v93_v1 = vld [vmem:[%s637_s2] sm:$0xff]  ;;  %v481_v3 = vmov 0   ;;  %v94_v4 = vld [vmem:[%s637_s2 + $0x8] sm:$0xff]  ;;  %v33_v6 = vld [vmem:[%s636_s1 + $0x18] sm:$0xff] }
   0x4   :  { %v30_v2 = vld [vmem:[%s636_s1] sm:$0xff]  ;;  %452 = vset.pattern.permute.xlu1 %v481_v3  ;;  %451 = vset.pattern.permute.xlu0 %v481_v3  ;;  %v31_v5 = vld [vmem:[%s636_s1 + $0x8] sm:$0xff]  ;;  %v32_v7 = vld [vmem:[%s636_s1 + $0x10] sm:$0xff] }
   0x5   :  { %103 = vperm.xlu1 %452, %v93_v1   ;;  %41 = vperm.xlu0 %451, %v30_v2   ;;  %v96_v8 = vld [vmem:[%s637_s2 + $0x18] sm:$0xff]  ;;  %v95_v9 = vld [vmem:[%s637_s2 + $0x10] sm:$0xff] }
   0x9   :  { %108 = vperm.xlu1 %452, %v94_v4   ;;  %46 = vperm.xlu0 %451, %v31_v5  }
   0xd   :  { %56 = vperm.xlu1 %452, %v33_v6   ;;  %51 = vperm.xlu0 %451, %v32_v7  }
   0xe   :  { %14 = vsyncpa [#allocation4], 0  ;;  %v35_v10 = vld [vmem:[%s636_s1 + $0x28] sm:$0xff]  ;;  %v34_v11 = vld [vmem:[%s636_s1 + $0x20] sm:$0xff]  ;;  %vm237_vm0 = vcmask 523264   ;;  %vm483_vm1 = vmmov 0  }
   0xf   :  { %v98_v12 = vld [vmem:[%s637_s2 + $0x28] sm:$0xff]  ;;  %v97_v13 = vld [vmem:[%s637_s2 + $0x20] sm:$0xff]  ;;  %v37_v14 = vld [vmem:[%s636_s1 + $0x38] sm:$0xff]  ;;  %s484_s6 = smov [#allocation3]  }
  0x10   :  { %v36_v15 = vld [vmem:[%s636_s1 + $0x30] sm:$0xff]  ;;  %v100_v16 = vld [vmem:[%s637_s2 + $0x38] sm:$0xff]  ;;  %v170_v18 = vld [vmem:[%s639_s4 + $0x8] sm:$0xff]  ;;  %s388_s10 = sshll.u32 %s484_s6, 4  ;;  %s389_s10 = int_to_ptr.vmem [resolvable:$true] %s388_s10 }
  0x11   :  { %118 = vperm.xlu1 %452, %v96_v8   ;;  %113 = vperm.xlu0 %451, %v95_v9   ;;  %v99_v17 = vld [vmem:[%s637_s2 + $0x30] sm:$0xff]  ;;  %v169_v19 = vld [vmem:[%s639_s4] sm:$0xff]  ;;  %v172_v20 = vld [vmem:[%s639_s4 + $0x18] sm:$0xff]  ;;  %s457_s11 = scalar_lea.vmem %s389_s10, 16  ;;  %s461_s12 = scalar_lea.vmem %s389_s10, 32 }
  0x12   :  { %v171_v21 = vld [vmem:[%s639_s4 + $0x10] sm:$0xff]  ;;  %v453_v22 = vld [vmem:[%s638_s3] sm:$0xff]   ;;  %v174_v23 = vld [vmem:[%s639_s4 + $0x28] sm:$0xff]  ;;  %p458_p0 = scmp.ne.s32.totalorder %s389_s10, %s457_s11  ;;  %p462_p1 = scmp.lt.s32.totalorder %s389_s10, %s389_s10 }
  0x13   :  { %v173_v24 = vld [vmem:[%s639_s4 + $0x20] sm:$0xff]  ;;  %427 = vmatprep.mubr.msk.bf16.mxu0 %vm237_vm0, %v453_v22  ;;  %v176_v25 = vld [vmem:[%s639_s4 + $0x38] sm:$0xff]  ;;  %v175_v26 = vld [vmem:[%s639_s4 + $0x30] sm:$0xff]  ;;  %p463_p2 = scmp.lt.s32.totalorder %s461_s12, %s457_s11 }
  0x14   :  { %v328_v27 = vld [vmem:[#allocation2] sm:$0x1]  ;;  %v454_v9 = vld [vmem:[%s638_s3 + $0x8] sm:$0xff]  }
  0x15   :  { %66 = vperm.xlu1 %452, %v35_v10   ;;  %61 = vperm.xlu0 %451, %v34_v11   ;;  %v396_v28 = vld [vmem:[%s635_s0] ss:$0 sm:$0xff]  ;;  %v455_v10 = vld [vmem:[%s638_s3 + $0x10] sm:$0xff]   ;;  %v456_v11 = vld [vmem:[%s638_s3 + $0x18] sm:$0xff]   ;;  %p464_p3 = por %p463_p2, %p462_p1 }
  0x17   :  { %p465_p4 = pnand %p464_p3, %p458_p0 }
  0x19   :  { %128 = vperm.xlu1 %452, %v98_v12   ;;  %123 = vperm.xlu0 %451, %v97_v13   ;;  %v482_v12 = vmov 0.0  }
  0x1a   :  { %435 = vmatprep.subr.bf16.mxu1 %v482_v12  ;;  %443 = vmatprep.mubr.msk.bf16.mxu1 %vm483_vm1, %v482_v12 }
  0x1d   :  { %76 = vperm.xlu1 %452, %v37_v14   ;;  %71 = vperm.xlu0 %451, %v36_v15  }
  0x21   :  { %138 = vperm.xlu1 %452, %v100_v16   ;;  %133 = vperm.xlu0 %451, %v99_v17  }
  0x25   :  { %184 = vperm.xlu1 %452, %v170_v18   ;;  %179 = vperm.xlu0 %451, %v169_v19  }
  0x29   :  { %194 = vperm.xlu1 %452, %v172_v20   ;;  %189 = vperm.xlu0 %451, %v171_v21  }
  0x2d   :  { %204 = vperm.xlu1 %452, %v174_v23   ;;  %199 = vperm.xlu0 %451, %v173_v24  }
  0x31   :  { %214 = vperm.xlu1 %452, %v176_v25   ;;  %209 = vperm.xlu0 %451, %v175_v26  }
  0x35   :  { %331 = vperm.xlu0 %451, %v328_v27  }
  0x84   :  { %v104_v29 = vpop.permute.xlu1 %103  ;;  %v42_v30 = vpop.permute.xlu0 %41 }
  0x85   :  { %v85_v31 = vmul.f32 %v396_v28, %v42_v30 }
  0x87   :  { %v141_v34 = vadd.f32 %v104_v29, %v85_v31 }
  0x88   :  { %v109_v32 = vpop.permute.xlu1 %108  ;;  %v47_v33 = vpop.permute.xlu0 %46 }
  0x89   :  { %v86_v35 = vmul.f32 %v396_v28, %v47_v33  ;;  %v149_v39 = vmax.f32 %v141_v34, 0.0 }
  0x8b   :  { %v142_v36 = vadd.f32 %v109_v32, %v86_v35 }
  0x8c   :  { %v57_v37 = vpop.permute.xlu1 %56  ;;  %v52_v38 = vpop.permute.xlu0 %51 }
  0x8d   :  { %v150_v40 = vmax.f32 %v142_v36, 0.0  ;;  %v88_v41 = vmul.f32 %v396_v28, %v57_v37  ;;  %v87_v42 = vmul.f32 %v396_v28, %v52_v38 }
  0x8f   :  { %v157_v43 = vpack.c.bf16 %v150_v40, %v149_v39 }
  0x90   :  { %v119_v44 = vpop.permute.xlu1 %118  ;;  %v114_v45 = vpop.permute.xlu0 %113 }
  0x91   :  { %v144_v46 = vadd.f32 %v119_v44, %v88_v41  ;;  %v143_v47 = vadd.f32 %v114_v45, %v87_v42  ;;  %419 = vmatprep.subr.bf16.mxu0 %v157_v43 }
  0x92   :  { %420 = vmatpush3.bf16.msra.mxu0 %v157_v43 }
  0x93   :  { %v152_v48 = vmax.f32 %v144_v46, 0.0  ;;  %v151_v49 = vmax.f32 %v143_v47, 0.0 }
  0x94   :  { %v67_v50 = vpop.permute.xlu1 %66  ;;  %v62_v51 = vpop.permute.xlu0 %61 }
  0x95   :  { %v158_v52 = vpack.c.bf16 %v152_v48, %v151_v49  ;;  %v90_v53 = vmul.f32 %v396_v28, %v67_v50  ;;  %v89_v54 = vmul.f32 %v396_v28, %v62_v51  ;;  %v323_v49 = vld [vmem:[%s640_s5] sm:$0x1]  ;;  %v334_v50 = vlaneseq }
  0x97   :  { %421 = vmatprep.subr.bf16.mxu0 %v158_v52  ;;  %v335_v51 = vshrl.u32 %v334_v50, 7 }
  0x98   :  { %v129_v55 = vpop.permute.xlu1 %128  ;;  %422 = vmatpush3.bf16.msra.mxu0 %v158_v52  ;;  %v124_v56 = vpop.permute.xlu0 %123 }
  0x99   :  { %v146_v57 = vadd.f32 %v129_v55, %v90_v53  ;;  %v145_v58 = vadd.f32 %v124_v56, %v89_v54  ;;  %v336_v52 = vsub.s32 0, %v335_v51 }
  0x9b   :  { %v154_v59 = vmax.f32 %v146_v57, 0.0  ;;  %v153_v60 = vmax.f32 %v145_v58, 0.0 }
  0x9c   :  { %v77_v61 = vpop.permute.xlu1 %76  ;;  %v72_v62 = vpop.permute.xlu0 %71 }
  0x9d   :  { %v159_v63 = vpack.c.bf16 %v154_v59, %v153_v60  ;;  %v92_v0 = vmul.f32 %v396_v28, %v77_v61  ;;  %v91_v1 = vmul.f32 %v396_v28, %v72_v62 }
  0x9f   :  { %423 = vmatprep.subr.bf16.mxu0 %v159_v63 }
  0xa0   :  { %v139_v2 = vpop.permute.xlu1 %138  ;;  %424 = vmatpush3.bf16.msra.mxu0 %v159_v63  ;;  %v134_v3 = vpop.permute.xlu0 %133 }
  0xa1   :  { %v148_v4 = vadd.f32 %v139_v2, %v92_v0  ;;  %v147_v5 = vadd.f32 %v134_v3, %v91_v1 }
  0xa3   :  { %v156_v6 = vmax.f32 %v148_v4, 0.0  ;;  %v155_v7 = vmax.f32 %v147_v5, 0.0 }
  0xa4   :  { %v180_v13 = vpop.permute.xlu0 %179  ;;  %v185_v14 = vpop.permute.xlu1 %184 }
  0xa5   :  { %v160_v8 = vpack.c.bf16 %v156_v6, %v155_v7 }
  0xa7   :  { %425 = vmatprep.subr.bf16.mxu0 %v160_v8 }
  0xa8   :  { %426 = vmatpush3.bf16.msra.mxu0 %v160_v8  ;;  %v190_v15 = vpop.permute.xlu0 %189  ;;  %v195_v16 = vpop.permute.xlu1 %194 }
  0xab   :  { %428 = vmatmul.mubr.msk.bf16.vlgmr.msra.gmra.mrb[0].mxu0 %vm237_vm0, %v454_v9 }
  0xac   :  { %431 = vmatprep.mubr.msk.bf16.mxu0 %vm237_vm0, %v455_v10  ;;  %v200_v20 = vpop.permute.xlu0 %199  ;;  %v205_v25 = vpop.permute.xlu1 %204 }
  0xb0   :  { %v210_v32 = vpop.permute.xlu0 %209  ;;  %v215_v37 = vpop.permute.xlu1 %214 }
  0xb3   :  { %432 = vmatmul.mubr.msk.bf16.gmra.mrb[4].mxu0 %vm237_vm0, %v456_v11 }
  0xb4   :  { %v332_v53 = vpop.permute.xlu0 %331 }
  0xb5   :  { %v337_v54 = vrot.slane %v332_v53, %v336_v52 }
 0x17e   :  { %v429_v17 = vpop.f32.mrb[0].mxu0 }
 0x17f   :  { %v293_v18 = vadd.f32 %v429_v17, %v190_v15  ;;  %v284_v19 = vpop.f32.mrb[1].mxu0 }
 0x180   :  { %v285_v21 = vadd.f32 %v284_v19, %v180_v13  ;;  %v430_v22 = vpop.f32.mrb[2].mxu0 }
 0x181   :  { %v296_v23 = vadd.f32 %v430_v22, %v195_v16  ;;  %v287_v24 = vpop.f32.mrb[3].mxu0  ;;  %v317_v27 = vmax.f32 %v293_v18, 0.0 }
 0x182   :  { %v288_v26 = vadd.f32 %v287_v24, %v185_v14  ;;  %v315_v29 = vmax.f32 %v285_v21, 0.0 }
 0x183   :  { %v318_v28 = vmax.f32 %v296_v23, 0.0 }
 0x184   :  { %v316_v30 = vmax.f32 %v288_v26, 0.0 }
 0x185   :  { %v325_v31 = vpack.c.bf16 %v318_v28, %v317_v27 }
 0x186   :  { %v433_v33 = vpop.f32.mrb[4].mxu0  ;;  %v324_v34 = vpack.c.bf16 %v316_v30, %v315_v29 }
 0x187   :  { %v309_v35 = vadd.f32 %v433_v33, %v210_v32  ;;  %v300_v36 = vpop.f32.mrb[5].mxu0 }
 0x188   :  { %v301_v38 = vadd.f32 %v300_v36, %v200_v20  ;;  %v434_v39 = vpop.f32.mrb[6].mxu0  ;;  %436 = vmatpush3.bf16.msra.mxu1 %v324_v34 }
 0x189   :  { %v312_v40 = vadd.f32 %v434_v39, %v215_v37  ;;  %v303_v41 = vpop.f32.mrb[7].mxu0  ;;  %437 = vmatprep.subr.bf16.mxu1 %v482_v12  ;;  %v321_v43 = vmax.f32 %v309_v35, 0.0 }
 0x18a   :  { %v304_v42 = vadd.f32 %v303_v41, %v205_v25  ;;  %v319_v45 = vmax.f32 %v301_v38, 0.0 }
 0x18b   :  { %v322_v44 = vmax.f32 %v312_v40, 0.0 }
 0x18c   :  { %v320_v46 = vmax.f32 %v304_v42, 0.0  ;;  %438 = vmatpush3.bf16.msra.mxu1 %v325_v31 }
 0x18d   :  { %v327_v47 = vpack.c.bf16 %v322_v44, %v321_v43  ;;  %439 = vmatprep.subr.bf16.mxu1 %v482_v12 }
 0x18e   :  { %v326_v48 = vpack.c.bf16 %v320_v46, %v319_v45 }
 0x190   :  { %440 = vmatpush3.bf16.msra.mxu1 %v326_v48 }
 0x191   :  { %441 = vmatprep.subr.bf16.mxu1 %v482_v12 }
 0x194   :  { %442 = vmatpush3.bf16.msra.mxu1 %v327_v47 }
 0x197   :  { %444 = vmatmul.mubr.msk.bf16.vlgmr.msra.gmra.mrb[0].mxu1 %vm237_vm0, %v323_v49 }
 0x26a   :  { %v375_v55 = vpop.f32.mrb[0].mxu1 }
 0x26b   :  { %v376_v56 = vadd.f32 %v375_v55, %v337_v54  ;;  %v445_v57 = vpop.f32.mrb[1].mxu1 }
 0x26c   :  { %v378_v58 = vpop.f32.mrb[2].mxu1 }
 0x26d   :  { %381 = vst [vmem:[#allocation3] sm:$0x1] %v376_v56  ;;  %v446_v59 = vpop.f32.mrb[3].mxu1 }
 0x26e   :  { %468 = shalt.err (!%p465_p4)
}
 0x26f   :  { %s469_s1 = scalar_lea.hbm %s642_s7, 16 }
 0x270   :  { %p470_p5 = scmp.ne.s32.totalorder %s642_s7, %s469_s1  ;;  %p473_p6 = scmp.lt.u32.totalorder %s469_s1, %s642_s7 }
 0x272   :  { %p475_p7 = pnand %p473_p6, %p470_p5 }
 0x274   :  { %478 = shalt.err (!%p475_p7)
}
 0x275   :  { %391 = dma.vmem_to_hbm [thread:$0]  %s389_s10, 16, %s642_s7, [#allocation4]  }
 0x276   :  { %479 = dma.done.wait [#allocation4], 16  }
 0x277   :  { %480 = vsyncadd [#allocation4], 4294967280 }
 0x278   :  { %395 = vsyncpa [#allocation4], 1 }

</bundles_post_ra>
